<compile_context>
chip_gen: v6e
topology: v6e:2x2x1
jax: 0.10.0
libtpu: 0.0.40
codegen_flags: <defaults>
</compile_context>

<pallas_src>
import jax
import jax.numpy as jnp
from jax.experimental import pallas as pl
from jax.experimental.pallas import tpu as pltpu


def _net_kernel(x_ref, w1_ref, b1_ref, w2h_ref, sc_ref, o_ref):
    # x_ref  : (tile_rows, 128) f32 lane-dense tile of the flattened batch
    # w1_ref : (n_basis,)  f32 SMEM  basis.weight[:, 0]
    # b1_ref : (n_basis,)  f32 SMEM  basis.bias
    # w2h_ref: (n_basis,)  f32 SMEM  out.weight[0, :n_basis]
    # sc_ref : (2,)        f32 SMEM  [out.weight[0, n_basis] (skip), out.bias]
    # o_ref  : (tile_rows, 128) f32 output tile
    x = x_ref[...]

    # Hoisted skip-connection + output bias (scalar -> vreg broadcast once).
    w2x = sc_ref[0]
    b2 = sc_ref[1]
    acc = x * w2x + b2

    # TODO(synk): dropout is identity here (inference mode); training-mode
    # dropout would mask terms with pltpu.prng_seed / pltpu.prng_random_bits.

    # Statically unrolled VPU fma/relu chain over the n_basis scalar coeffs;
    # accumulator stays vreg-resident (no VMEM scratch, no MXU, no XLU).
    n_basis = w1_ref.shape[0]
    for j in range(n_basis):
        acc = acc + jnp.maximum(x * w1_ref[j] + b1_ref[j], 0.0) * w2h_ref[j]

    o_ref[...] = acc.astype(o_ref.dtype)


def net_forward(x, basis_w, basis_b, out_w, out_b, *, max_tile_rows=512):
    """Forward of Net (inference). PyTorch parameter shapes:
       basis_w (n_basis, 1), basis_b (n_basis,), out_w (1, n_basis+1), out_b (1,).
       x: (B, 1) float32."""
    B = x.shape[0]
    n_basis = basis_w.shape[0]
    LANES = 128

    # Parameters as 1D scalar tables for SMEM residence.
    w1 = basis_w.reshape(n_basis).astype(jnp.float32)           # (n_basis,)
    b1 = basis_b.reshape(n_basis).astype(jnp.float32)           # (n_basis,)
    w2h = out_w[0, :n_basis].astype(jnp.float32)                # (n_basis,)
    scalars = jnp.stack([out_w[0, n_basis].astype(jnp.float32),
                         out_b.reshape(()).astype(jnp.float32)])  # [w2x, b2]

    # Lane-dense layout: (B, 1) -> padded (rows, 128), rows multiple of tile.
    rows = -(-B // LANES)                       # ceil(B / 128)
    rows = -(-rows // 8) * 8                    # sublane-align
    tile_rows = min(max_tile_rows, rows)        # <= 512x128 f32 = 256 KiB/buf
    rows = -(-rows // tile_rows) * tile_rows    # whole number of tiles
    pad_b = rows * LANES

    xf = x.reshape(-1).astype(jnp.float32)
    xp = jnp.zeros((pad_b,), jnp.float32).at[:B].set(xf).reshape(rows, LANES)

    smem_spec = pl.BlockSpec(memory_space=pltpu.MemorySpace.SMEM)

    out = pl.pallas_call(
        _net_kernel,
        out_shape=jax.ShapeDtypeStruct((rows, LANES), jnp.float32),
        grid=(rows // tile_rows,),
        in_specs=[
            pl.BlockSpec((tile_rows, LANES), lambda i: (i, 0)),
            smem_spec,   # w1
            smem_spec,   # b1
            smem_spec,   # w2h
            smem_spec,   # [w2x, b2]
        ],
        out_specs=pl.BlockSpec((tile_rows, LANES), lambda i: (i, 0)),
        compiler_params=pltpu.CompilerParams(
            dimension_semantics=("parallel",),
            vmem_limit_bytes=32 << 20,
        ),
    )(xp, w1, b1, w2h, scalars)

    return out.reshape(-1)[:B].reshape(B, 1)


def net_reference(x, basis_w, basis_b, out_w, out_b):
    h = jnp.maximum(x @ basis_w.T + basis_b[None, :], 0.0)
    cat = jnp.concatenate([h, x], axis=1)
    return cat @ out_w.T + out_b[None, :]


if __name__ == "__main__":
    n_basis = 32
    batch = 8
    dropout_p = 0.5  # identity at inference

    key = jax.random.PRNGKey(0)
    kx, k1, k2, k3, k4 = jax.random.split(key, 5)

    x = jax.random.normal(kx, (batch, 1), dtype=jnp.float32)

    # Deterministic parameters in PyTorch nn.Linear shapes.
    basis_w = jax.random.normal(k1, (n_basis, 1), dtype=jnp.float32) * 0.5
    basis_b = jax.random.normal(k2, (n_basis,), dtype=jnp.float32) * 0.1
    out_w = jax.random.normal(k3, (1, n_basis + 1), dtype=jnp.float32) * 0.2
    out_b = jax.random.normal(k4, (1,), dtype=jnp.float32) * 0.1

    y = net_forward(x, basis_w, basis_b, out_w, out_b)
    jax.block_until_ready(y)

    y_ref = net_reference(x, basis_w, basis_b, out_w, out_b)
    assert y.shape == (batch, 1)
    assert jnp.allclose(y, y_ref, atol=1e-5, rtol=1e-5), "mismatch vs reference"

    print("KERNEL_OK")
</pallas_src>

<mosaic_0001>
module attributes {stable_mosaic.version = 11 : i64} {
  func.func @_net_kernel(%arg0: i32, %arg1: memref<8x128xf32, #tpu.memory_space<vmem>>, %arg2: memref<32xf32, #tpu.memory_space<smem>>, %arg3: memref<32xf32, #tpu.memory_space<smem>>, %arg4: memref<32xf32, #tpu.memory_space<smem>>, %arg5: memref<2xf32, #tpu.memory_space<smem>>, %arg6: memref<8x128xf32, #tpu.memory_space<vmem>>) attributes {dimension_semantics = [#tpu.dimension_semantics<parallel>], iteration_bounds = array<i64: 1>, scalar_prefetch = 0 : i64, scratch_operands = 0 : i64, tpu.core_type = #tpu.core_type<tc>, window_params = [{transform_indices = @transform_0, window_bounds = array<i64: 8, 128>}, {transform_indices = @transform_1, window_bounds = array<i64: 32>}, {transform_indices = @transform_2, window_bounds = array<i64: 32>}, {transform_indices = @transform_3, window_bounds = array<i64: 32>}, {transform_indices = @transform_4, window_bounds = array<i64: 2>}, {transform_indices = @transform_5, window_bounds = array<i64: 8, 128>}]} {
    %c0 = arith.constant 0 : index
    %c0_0 = arith.constant 0 : index
    %0 = vector.load %arg1[%c0, %c0_0] : memref<8x128xf32, #tpu.memory_space<vmem>>, vector<8x128xf32>
    %c0_1 = arith.constant 0 : index
    %1 = memref.load %arg5[%c0_1] : memref<2xf32, #tpu.memory_space<smem>>
    %c1 = arith.constant 1 : index
    %2 = memref.load %arg5[%c1] : memref<2xf32, #tpu.memory_space<smem>>
    %3 = vector.broadcast %1 : f32 to vector<8x128xf32>
    %4 = arith.mulf %0, %3 : vector<8x128xf32>
    %5 = vector.broadcast %2 : f32 to vector<8x128xf32>
    %6 = arith.addf %4, %5 : vector<8x128xf32>
    %c0_2 = arith.constant 0 : index
    %7 = memref.load %arg2[%c0_2] : memref<32xf32, #tpu.memory_space<smem>>
    %8 = vector.broadcast %7 : f32 to vector<8x128xf32>
    %9 = arith.mulf %0, %8 : vector<8x128xf32>
    %c0_3 = arith.constant 0 : index
    %10 = memref.load %arg3[%c0_3] : memref<32xf32, #tpu.memory_space<smem>>
    %11 = vector.broadcast %10 : f32 to vector<8x128xf32>
    %12 = arith.addf %9, %11 : vector<8x128xf32>
    %cst = arith.constant 0.000000e+00 : f32
    %13 = vector.broadcast %cst : f32 to vector<8x128xf32>
    %14 = arith.maximumf %12, %13 : vector<8x128xf32>
    %c0_4 = arith.constant 0 : index
    %15 = memref.load %arg4[%c0_4] : memref<32xf32, #tpu.memory_space<smem>>
    %16 = vector.broadcast %15 : f32 to vector<8x128xf32>
    %17 = arith.mulf %14, %16 : vector<8x128xf32>
    %18 = arith.addf %6, %17 : vector<8x128xf32>
    %c1_5 = arith.constant 1 : index
    %19 = memref.load %arg2[%c1_5] : memref<32xf32, #tpu.memory_space<smem>>
    %20 = vector.broadcast %19 : f32 to vector<8x128xf32>
    %21 = arith.mulf %0, %20 : vector<8x128xf32>
    %c1_6 = arith.constant 1 : index
    %22 = memref.load %arg3[%c1_6] : memref<32xf32, #tpu.memory_space<smem>>
    %23 = vector.broadcast %22 : f32 to vector<8x128xf32>
    %24 = arith.addf %21, %23 : vector<8x128xf32>
    %cst_7 = arith.constant 0.000000e+00 : f32
    %25 = vector.broadcast %cst_7 : f32 to vector<8x128xf32>
    %26 = arith.maximumf %24, %25 : vector<8x128xf32>
    %c1_8 = arith.constant 1 : index
    %27 = memref.load %arg4[%c1_8] : memref<32xf32, #tpu.memory_space<smem>>
    %28 = vector.broadcast %27 : f32 to vector<8x128xf32>
    %29 = arith.mulf %26, %28 : vector<8x128xf32>
    %30 = arith.addf %18, %29 : vector<8x128xf32>
    %c2 = arith.constant 2 : index
    %31 = memref.load %arg2[%c2] : memref<32xf32, #tpu.memory_space<smem>>
    %32 = vector.broadcast %31 : f32 to vector<8x128xf32>
    %33 = arith.mulf %0, %32 : vector<8x128xf32>
    %c2_9 = arith.constant 2 : index
    %34 = memref.load %arg3[%c2_9] : memref<32xf32, #tpu.memory_space<smem>>
    %35 = vector.broadcast %34 : f32 to vector<8x128xf32>
    %36 = arith.addf %33, %35 : vector<8x128xf32>
    %cst_10 = arith.constant 0.000000e+00 : f32
    %37 = vector.broadcast %cst_10 : f32 to vector<8x128xf32>
    %38 = arith.maximumf %36, %37 : vector<8x128xf32>
    %c2_11 = arith.constant 2 : index
    %39 = memref.load %arg4[%c2_11] : memref<32xf32, #tpu.memory_space<smem>>
    %40 = vector.broadcast %39 : f32 to vector<8x128xf32>
    %41 = arith.mulf %38, %40 : vector<8x128xf32>
    %42 = arith.addf %30, %41 : vector<8x128xf32>
    %c3 = arith.constant 3 : index
    %43 = memref.load %arg2[%c3] : memref<32xf32, #tpu.memory_space<smem>>
    %44 = vector.broadcast %43 : f32 to vector<8x128xf32>
    %45 = arith.mulf %0, %44 : vector<8x128xf32>
    %c3_12 = arith.constant 3 : index
    %46 = memref.load %arg3[%c3_12] : memref<32xf32, #tpu.memory_space<smem>>
    %47 = vector.broadcast %46 : f32 to vector<8x128xf32>
    %48 = arith.addf %45, %47 : vector<8x128xf32>
    %cst_13 = arith.constant 0.000000e+00 : f32
    %49 = vector.broadcast %cst_13 : f32 to vector<8x128xf32>
    %50 = arith.maximumf %48, %49 : vector<8x128xf32>
    %c3_14 = arith.constant 3 : index
    %51 = memref.load %arg4[%c3_14] : memref<32xf32, #tpu.memory_space<smem>>
    %52 = vector.broadcast %51 : f32 to vector<8x128xf32>
    %53 = arith.mulf %50, %52 : vector<8x128xf32>
    %54 = arith.addf %42, %53 : vector<8x128xf32>
    %c4 = arith.constant 4 : index
    %55 = memref.load %arg2[%c4] : memref<32xf32, #tpu.memory_space<smem>>
    %56 = vector.broadcast %55 : f32 to vector<8x128xf32>
    %57 = arith.mulf %0, %56 : vector<8x128xf32>
    %c4_15 = arith.constant 4 : index
    %58 = memref.load %arg3[%c4_15] : memref<32xf32, #tpu.memory_space<smem>>
    %59 = vector.broadcast %58 : f32 to vector<8x128xf32>
    %60 = arith.addf %57, %59 : vector<8x128xf32>
    %cst_16 = arith.constant 0.000000e+00 : f32
    %61 = vector.broadcast %cst_16 : f32 to vector<8x128xf32>
    %62 = arith.maximumf %60, %61 : vector<8x128xf32>
    %c4_17 = arith.constant 4 : index
    %63 = memref.load %arg4[%c4_17] : memref<32xf32, #tpu.memory_space<smem>>
    %64 = vector.broadcast %63 : f32 to vector<8x128xf32>
    %65 = arith.mulf %62, %64 : vector<8x128xf32>
    %66 = arith.addf %54, %65 : vector<8x128xf32>
    %c5 = arith.constant 5 : index
    %67 = memref.load %arg2[%c5] : memref<32xf32, #tpu.memory_space<smem>>
    %68 = vector.broadcast %67 : f32 to vector<8x128xf32>
    %69 = arith.mulf %0, %68 : vector<8x128xf32>
    %c5_18 = arith.constant 5 : index
    %70 = memref.load %arg3[%c5_18] : memref<32xf32, #tpu.memory_space<smem>>
    %71 = vector.broadcast %70 : f32 to vector<8x128xf32>
    %72 = arith.addf %69, %71 : vector<8x128xf32>
    %cst_19 = arith.constant 0.000000e+00 : f32
    %73 = vector.broadcast %cst_19 : f32 to vector<8x128xf32>
    %74 = arith.maximumf %72, %73 : vector<8x128xf32>
    %c5_20 = arith.constant 5 : index
    %75 = memref.load %arg4[%c5_20] : memref<32xf32, #tpu.memory_space<smem>>
    %76 = vector.broadcast %75 : f32 to vector<8x128xf32>
    %77 = arith.mulf %74, %76 : vector<8x128xf32>
    %78 = arith.addf %66, %77 : vector<8x128xf32>
    %c6 = arith.constant 6 : index
    %79 = memref.load %arg2[%c6] : memref<32xf32, #tpu.memory_space<smem>>
    %80 = vector.broadcast %79 : f32 to vector<8x128xf32>
    %81 = arith.mulf %0, %80 : vector<8x128xf32>
    %c6_21 = arith.constant 6 : index
    %82 = memref.load %arg3[%c6_21] : memref<32xf32, #tpu.memory_space<smem>>
    %83 = vector.broadcast %82 : f32 to vector<8x128xf32>
    %84 = arith.addf %81, %83 : vector<8x128xf32>
    %cst_22 = arith.constant 0.000000e+00 : f32
    %85 = vector.broadcast %cst_22 : f32 to vector<8x128xf32>
    %86 = arith.maximumf %84, %85 : vector<8x128xf32>
    %c6_23 = arith.constant 6 : index
    %87 = memref.load %arg4[%c6_23] : memref<32xf32, #tpu.memory_space<smem>>
    %88 = vector.broadcast %87 : f32 to vector<8x128xf32>
    %89 = arith.mulf %86, %88 : vector<8x128xf32>
    %90 = arith.addf %78, %89 : vector<8x128xf32>
    %c7 = arith.constant 7 : index
    %91 = memref.load %arg2[%c7] : memref<32xf32, #tpu.memory_space<smem>>
    %92 = vector.broadcast %91 : f32 to vector<8x128xf32>
    %93 = arith.mulf %0, %92 : vector<8x128xf32>
    %c7_24 = arith.constant 7 : index
    %94 = memref.load %arg3[%c7_24] : memref<32xf32, #tpu.memory_space<smem>>
    %95 = vector.broadcast %94 : f32 to vector<8x128xf32>
    %96 = arith.addf %93, %95 : vector<8x128xf32>
    %cst_25 = arith.constant 0.000000e+00 : f32
    %97 = vector.broadcast %cst_25 : f32 to vector<8x128xf32>
    %98 = arith.maximumf %96, %97 : vector<8x128xf32>
    %c7_26 = arith.constant 7 : index
    %99 = memref.load %arg4[%c7_26] : memref<32xf32, #tpu.memory_space<smem>>
    %100 = vector.broadcast %99 : f32 to vector<8x128xf32>
    %101 = arith.mulf %98, %100 : vector<8x128xf32>
    %102 = arith.addf %90, %101 : vector<8x128xf32>
    %c8 = arith.constant 8 : index
    %103 = memref.load %arg2[%c8] : memref<32xf32, #tpu.memory_space<smem>>
    %104 = vector.broadcast %103 : f32 to vector<8x128xf32>
    %105 = arith.mulf %0, %104 : vector<8x128xf32>
    %c8_27 = arith.constant 8 : index
    %106 = memref.load %arg3[%c8_27] : memref<32xf32, #tpu.memory_space<smem>>
    %107 = vector.broadcast %106 : f32 to vector<8x128xf32>
    %108 = arith.addf %105, %107 : vector<8x128xf32>
    %cst_28 = arith.constant 0.000000e+00 : f32
    %109 = vector.broadcast %cst_28 : f32 to vector<8x128xf32>
    %110 = arith.maximumf %108, %109 : vector<8x128xf32>
    %c8_29 = arith.constant 8 : index
    %111 = memref.load %arg4[%c8_29] : memref<32xf32, #tpu.memory_space<smem>>
    %112 = vector.broadcast %111 : f32 to vector<8x128xf32>
    %113 = arith.mulf %110, %112 : vector<8x128xf32>
    %114 = arith.addf %102, %113 : vector<8x128xf32>
    %c9 = arith.constant 9 : index
    %115 = memref.load %arg2[%c9] : memref<32xf32, #tpu.memory_space<smem>>
    %116 = vector.broadcast %115 : f32 to vector<8x128xf32>
    %117 = arith.mulf %0, %116 : vector<8x128xf32>
    %c9_30 = arith.constant 9 : index
    %118 = memref.load %arg3[%c9_30] : memref<32xf32, #tpu.memory_space<smem>>
    %119 = vector.broadcast %118 : f32 to vector<8x128xf32>
    %120 = arith.addf %117, %119 : vector<8x128xf32>
    %cst_31 = arith.constant 0.000000e+00 : f32
    %121 = vector.broadcast %cst_31 : f32 to vector<8x128xf32>
    %122 = arith.maximumf %120, %121 : vector<8x128xf32>
    %c9_32 = arith.constant 9 : index
    %123 = memref.load %arg4[%c9_32] : memref<32xf32, #tpu.memory_space<smem>>
    %124 = vector.broadcast %123 : f32 to vector<8x128xf32>
    %125 = arith.mulf %122, %124 : vector<8x128xf32>
    %126 = arith.addf %114, %125 : vector<8x128xf32>
    %c10 = arith.constant 10 : index
    %127 = memref.load %arg2[%c10] : memref<32xf32, #tpu.memory_space<smem>>
    %128 = vector.broadcast %127 : f32 to vector<8x128xf32>
    %129 = arith.mulf %0, %128 : vector<8x128xf32>
    %c10_33 = arith.constant 10 : index
    %130 = memref.load %arg3[%c10_33] : memref<32xf32, #tpu.memory_space<smem>>
    %131 = vector.broadcast %130 : f32 to vector<8x128xf32>
    %132 = arith.addf %129, %131 : vector<8x128xf32>
    %cst_34 = arith.constant 0.000000e+00 : f32
    %133 = vector.broadcast %cst_34 : f32 to vector<8x128xf32>
    %134 = arith.maximumf %132, %133 : vector<8x128xf32>
    %c10_35 = arith.constant 10 : index
    %135 = memref.load %arg4[%c10_35] : memref<32xf32, #tpu.memory_space<smem>>
    %136 = vector.broadcast %135 : f32 to vector<8x128xf32>
    %137 = arith.mulf %134, %136 : vector<8x128xf32>
    %138 = arith.addf %126, %137 : vector<8x128xf32>
    %c11 = arith.constant 11 : index
    %139 = memref.load %arg2[%c11] : memref<32xf32, #tpu.memory_space<smem>>
    %140 = vector.broadcast %139 : f32 to vector<8x128xf32>
    %141 = arith.mulf %0, %140 : vector<8x128xf32>
    %c11_36 = arith.constant 11 : index
    %142 = memref.load %arg3[%c11_36] : memref<32xf32, #tpu.memory_space<smem>>
    %143 = vector.broadcast %142 : f32 to vector<8x128xf32>
    %144 = arith.addf %141, %143 : vector<8x128xf32>
    %cst_37 = arith.constant 0.000000e+00 : f32
    %145 = vector.broadcast %cst_37 : f32 to vector<8x128xf32>
    %146 = arith.maximumf %144, %145 : vector<8x128xf32>
    %c11_38 = arith.constant 11 : index
    %147 = memref.load %arg4[%c11_38] : memref<32xf32, #tpu.memory_space<smem>>
    %148 = vector.broadcast %147 : f32 to vector<8x128xf32>
    %149 = arith.mulf %146, %148 : vector<8x128xf32>
    %150 = arith.addf %138, %149 : vector<8x128xf32>
    %c12 = arith.constant 12 : index
    %151 = memref.load %arg2[%c12] : memref<32xf32, #tpu.memory_space<smem>>
    %152 = vector.broadcast %151 : f32 to vector<8x128xf32>
    %153 = arith.mulf %0, %152 : vector<8x128xf32>
    %c12_39 = arith.constant 12 : index
    %154 = memref.load %arg3[%c12_39] : memref<32xf32, #tpu.memory_space<smem>>
    %155 = vector.broadcast %154 : f32 to vector<8x128xf32>
    %156 = arith.addf %153, %155 : vector<8x128xf32>
    %cst_40 = arith.constant 0.000000e+00 : f32
    %157 = vector.broadcast %cst_40 : f32 to vector<8x128xf32>
    %158 = arith.maximumf %156, %157 : vector<8x128xf32>
    %c12_41 = arith.constant 12 : index
    %159 = memref.load %arg4[%c12_41] : memref<32xf32, #tpu.memory_space<smem>>
    %160 = vector.broadcast %159 : f32 to vector<8x128xf32>
    %161 = arith.mulf %158, %160 : vector<8x128xf32>
    %162 = arith.addf %150, %161 : vector<8x128xf32>
    %c13 = arith.constant 13 : index
    %163 = memref.load %arg2[%c13] : memref<32xf32, #tpu.memory_space<smem>>
    %164 = vector.broadcast %163 : f32 to vector<8x128xf32>
    %165 = arith.mulf %0, %164 : vector<8x128xf32>
    %c13_42 = arith.constant 13 : index
    %166 = memref.load %arg3[%c13_42] : memref<32xf32, #tpu.memory_space<smem>>
    %167 = vector.broadcast %166 : f32 to vector<8x128xf32>
    %168 = arith.addf %165, %167 : vector<8x128xf32>
    %cst_43 = arith.constant 0.000000e+00 : f32
    %169 = vector.broadcast %cst_43 : f32 to vector<8x128xf32>
    %170 = arith.maximumf %168, %169 : vector<8x128xf32>
    %c13_44 = arith.constant 13 : index
    %171 = memref.load %arg4[%c13_44] : memref<32xf32, #tpu.memory_space<smem>>
    %172 = vector.broadcast %171 : f32 to vector<8x128xf32>
    %173 = arith.mulf %170, %172 : vector<8x128xf32>
    %174 = arith.addf %162, %173 : vector<8x128xf32>
    %c14 = arith.constant 14 : index
    %175 = memref.load %arg2[%c14] : memref<32xf32, #tpu.memory_space<smem>>
    %176 = vector.broadcast %175 : f32 to vector<8x128xf32>
    %177 = arith.mulf %0, %176 : vector<8x128xf32>
    %c14_45 = arith.constant 14 : index
    %178 = memref.load %arg3[%c14_45] : memref<32xf32, #tpu.memory_space<smem>>
    %179 = vector.broadcast %178 : f32 to vector<8x128xf32>
    %180 = arith.addf %177, %179 : vector<8x128xf32>
    %cst_46 = arith.constant 0.000000e+00 : f32
    %181 = vector.broadcast %cst_46 : f32 to vector<8x128xf32>
    %182 = arith.maximumf %180, %181 : vector<8x128xf32>
    %c14_47 = arith.constant 14 : index
    %183 = memref.load %arg4[%c14_47] : memref<32xf32, #tpu.memory_space<smem>>
    %184 = vector.broadcast %183 : f32 to vector<8x128xf32>
    %185 = arith.mulf %182, %184 : vector<8x128xf32>
    %186 = arith.addf %174, %185 : vector<8x128xf32>
    %c15 = arith.constant 15 : index
    %187 = memref.load %arg2[%c15] : memref<32xf32, #tpu.memory_space<smem>>
    %188 = vector.broadcast %187 : f32 to vector<8x128xf32>
    %189 = arith.mulf %0, %188 : vector<8x128xf32>
    %c15_48 = arith.constant 15 : index
    %190 = memref.load %arg3[%c15_48] : memref<32xf32, #tpu.memory_space<smem>>
    %191 = vector.broadcast %190 : f32 to vector<8x128xf32>
    %192 = arith.addf %189, %191 : vector<8x128xf32>
    %cst_49 = arith.constant 0.000000e+00 : f32
    %193 = vector.broadcast %cst_49 : f32 to vector<8x128xf32>
    %194 = arith.maximumf %192, %193 : vector<8x128xf32>
    %c15_50 = arith.constant 15 : index
    %195 = memref.load %arg4[%c15_50] : memref<32xf32, #tpu.memory_space<smem>>
    %196 = vector.broadcast %195 : f32 to vector<8x128xf32>
    %197 = arith.mulf %194, %196 : vector<8x128xf32>
    %198 = arith.addf %186, %197 : vector<8x128xf32>
    %c16 = arith.constant 16 : index
    %199 = memref.load %arg2[%c16] : memref<32xf32, #tpu.memory_space<smem>>
    %200 = vector.broadcast %199 : f32 to vector<8x128xf32>
    %201 = arith.mulf %0, %200 : vector<8x128xf32>
    %c16_51 = arith.constant 16 : index
    %202 = memref.load %arg3[%c16_51] : memref<32xf32, #tpu.memory_space<smem>>
    %203 = vector.broadcast %202 : f32 to vector<8x128xf32>
    %204 = arith.addf %201, %203 : vector<8x128xf32>
    %cst_52 = arith.constant 0.000000e+00 : f32
    %205 = vector.broadcast %cst_52 : f32 to vector<8x128xf32>
    %206 = arith.maximumf %204, %205 : vector<8x128xf32>
    %c16_53 = arith.constant 16 : index
    %207 = memref.load %arg4[%c16_53] : memref<32xf32, #tpu.memory_space<smem>>
    %208 = vector.broadcast %207 : f32 to vector<8x128xf32>
    %209 = arith.mulf %206, %208 : vector<8x128xf32>
    %210 = arith.addf %198, %209 : vector<8x128xf32>
    %c17 = arith.constant 17 : index
    %211 = memref.load %arg2[%c17] : memref<32xf32, #tpu.memory_space<smem>>
    %212 = vector.broadcast %211 : f32 to vector<8x128xf32>
    %213 = arith.mulf %0, %212 : vector<8x128xf32>
    %c17_54 = arith.constant 17 : index
    %214 = memref.load %arg3[%c17_54] : memref<32xf32, #tpu.memory_space<smem>>
    %215 = vector.broadcast %214 : f32 to vector<8x128xf32>
    %216 = arith.addf %213, %215 : vector<8x128xf32>
    %cst_55 = arith.constant 0.000000e+00 : f32
    %217 = vector.broadcast %cst_55 : f32 to vector<8x128xf32>
    %218 = arith.maximumf %216, %217 : vector<8x128xf32>
    %c17_56 = arith.constant 17 : index
    %219 = memref.load %arg4[%c17_56] : memref<32xf32, #tpu.memory_space<smem>>
    %220 = vector.broadcast %219 : f32 to vector<8x128xf32>
    %221 = arith.mulf %218, %220 : vector<8x128xf32>
    %222 = arith.addf %210, %221 : vector<8x128xf32>
    %c18 = arith.constant 18 : index
    %223 = memref.load %arg2[%c18] : memref<32xf32, #tpu.memory_space<smem>>
    %224 = vector.broadcast %223 : f32 to vector<8x128xf32>
    %225 = arith.mulf %0, %224 : vector<8x128xf32>
    %c18_57 = arith.constant 18 : index
    %226 = memref.load %arg3[%c18_57] : memref<32xf32, #tpu.memory_space<smem>>
    %227 = vector.broadcast %226 : f32 to vector<8x128xf32>
    %228 = arith.addf %225, %227 : vector<8x128xf32>
    %cst_58 = arith.constant 0.000000e+00 : f32
    %229 = vector.broadcast %cst_58 : f32 to vector<8x128xf32>
    %230 = arith.maximumf %228, %229 : vector<8x128xf32>
    %c18_59 = arith.constant 18 : index
    %231 = memref.load %arg4[%c18_59] : memref<32xf32, #tpu.memory_space<smem>>
    %232 = vector.broadcast %231 : f32 to vector<8x128xf32>
    %233 = arith.mulf %230, %232 : vector<8x128xf32>
    %234 = arith.addf %222, %233 : vector<8x128xf32>
    %c19 = arith.constant 19 : index
    %235 = memref.load %arg2[%c19] : memref<32xf32, #tpu.memory_space<smem>>
    %236 = vector.broadcast %235 : f32 to vector<8x128xf32>
    %237 = arith.mulf %0, %236 : vector<8x128xf32>
    %c19_60 = arith.constant 19 : index
    %238 = memref.load %arg3[%c19_60] : memref<32xf32, #tpu.memory_space<smem>>
    %239 = vector.broadcast %238 : f32 to vector<8x128xf32>
    %240 = arith.addf %237, %239 : vector<8x128xf32>
    %cst_61 = arith.constant 0.000000e+00 : f32
    %241 = vector.broadcast %cst_61 : f32 to vector<8x128xf32>
    %242 = arith.maximumf %240, %241 : vector<8x128xf32>
    %c19_62 = arith.constant 19 : index
    %243 = memref.load %arg4[%c19_62] : memref<32xf32, #tpu.memory_space<smem>>
    %244 = vector.broadcast %243 : f32 to vector<8x128xf32>
    %245 = arith.mulf %242, %244 : vector<8x128xf32>
    %246 = arith.addf %234, %245 : vector<8x128xf32>
    %c20 = arith.constant 20 : index
    %247 = memref.load %arg2[%c20] : memref<32xf32, #tpu.memory_space<smem>>
    %248 = vector.broadcast %247 : f32 to vector<8x128xf32>
    %249 = arith.mulf %0, %248 : vector<8x128xf32>
    %c20_63 = arith.constant 20 : index
    %250 = memref.load %arg3[%c20_63] : memref<32xf32, #tpu.memory_space<smem>>
    %251 = vector.broadcast %250 : f32 to vector<8x128xf32>
    %252 = arith.addf %249, %251 : vector<8x128xf32>
    %cst_64 = arith.constant 0.000000e+00 : f32
    %253 = vector.broadcast %cst_64 : f32 to vector<8x128xf32>
    %254 = arith.maximumf %252, %253 : vector<8x128xf32>
    %c20_65 = arith.constant 20 : index
    %255 = memref.load %arg4[%c20_65] : memref<32xf32, #tpu.memory_space<smem>>
    %256 = vector.broadcast %255 : f32 to vector<8x128xf32>
    %257 = arith.mulf %254, %256 : vector<8x128xf32>
    %258 = arith.addf %246, %257 : vector<8x128xf32>
    %c21 = arith.constant 21 : index
    %259 = memref.load %arg2[%c21] : memref<32xf32, #tpu.memory_space<smem>>
    %260 = vector.broadcast %259 : f32 to vector<8x128xf32>
    %261 = arith.mulf %0, %260 : vector<8x128xf32>
    %c21_66 = arith.constant 21 : index
    %262 = memref.load %arg3[%c21_66] : memref<32xf32, #tpu.memory_space<smem>>
    %263 = vector.broadcast %262 : f32 to vector<8x128xf32>
    %264 = arith.addf %261, %263 : vector<8x128xf32>
    %cst_67 = arith.constant 0.000000e+00 : f32
    %265 = vector.broadcast %cst_67 : f32 to vector<8x128xf32>
    %266 = arith.maximumf %264, %265 : vector<8x128xf32>
    %c21_68 = arith.constant 21 : index
    %267 = memref.load %arg4[%c21_68] : memref<32xf32, #tpu.memory_space<smem>>
    %268 = vector.broadcast %267 : f32 to vector<8x128xf32>
    %269 = arith.mulf %266, %268 : vector<8x128xf32>
    %270 = arith.addf %258, %269 : vector<8x128xf32>
    %c22 = arith.constant 22 : index
    %271 = memref.load %arg2[%c22] : memref<32xf32, #tpu.memory_space<smem>>
    %272 = vector.broadcast %271 : f32 to vector<8x128xf32>
    %273 = arith.mulf %0, %272 : vector<8x128xf32>
    %c22_69 = arith.constant 22 : index
    %274 = memref.load %arg3[%c22_69] : memref<32xf32, #tpu.memory_space<smem>>
    %275 = vector.broadcast %274 : f32 to vector<8x128xf32>
    %276 = arith.addf %273, %275 : vector<8x128xf32>
    %cst_70 = arith.constant 0.000000e+00 : f32
    %277 = vector.broadcast %cst_70 : f32 to vector<8x128xf32>
    %278 = arith.maximumf %276, %277 : vector<8x128xf32>
    %c22_71 = arith.constant 22 : index
    %279 = memref.load %arg4[%c22_71] : memref<32xf32, #tpu.memory_space<smem>>
    %280 = vector.broadcast %279 : f32 to vector<8x128xf32>
    %281 = arith.mulf %278, %280 : vector<8x128xf32>
    %282 = arith.addf %270, %281 : vector<8x128xf32>
    %c23 = arith.constant 23 : index
    %283 = memref.load %arg2[%c23] : memref<32xf32, #tpu.memory_space<smem>>
    %284 = vector.broadcast %283 : f32 to vector<8x128xf32>
    %285 = arith.mulf %0, %284 : vector<8x128xf32>
    %c23_72 = arith.constant 23 : index
    %286 = memref.load %arg3[%c23_72] : memref<32xf32, #tpu.memory_space<smem>>
    %287 = vector.broadcast %286 : f32 to vector<8x128xf32>
    %288 = arith.addf %285, %287 : vector<8x128xf32>
    %cst_73 = arith.constant 0.000000e+00 : f32
    %289 = vector.broadcast %cst_73 : f32 to vector<8x128xf32>
    %290 = arith.maximumf %288, %289 : vector<8x128xf32>
    %c23_74 = arith.constant 23 : index
    %291 = memref.load %arg4[%c23_74] : memref<32xf32, #tpu.memory_space<smem>>
    %292 = vector.broadcast %291 : f32 to vector<8x128xf32>
    %293 = arith.mulf %290, %292 : vector<8x128xf32>
    %294 = arith.addf %282, %293 : vector<8x128xf32>
    %c24 = arith.constant 24 : index
    %295 = memref.load %arg2[%c24] : memref<32xf32, #tpu.memory_space<smem>>
    %296 = vector.broadcast %295 : f32 to vector<8x128xf32>
    %297 = arith.mulf %0, %296 : vector<8x128xf32>
    %c24_75 = arith.constant 24 : index
    %298 = memref.load %arg3[%c24_75] : memref<32xf32, #tpu.memory_space<smem>>
    %299 = vector.broadcast %298 : f32 to vector<8x128xf32>
    %300 = arith.addf %297, %299 : vector<8x128xf32>
    %cst_76 = arith.constant 0.000000e+00 : f32
    %301 = vector.broadcast %cst_76 : f32 to vector<8x128xf32>
    %302 = arith.maximumf %300, %301 : vector<8x128xf32>
    %c24_77 = arith.constant 24 : index
    %303 = memref.load %arg4[%c24_77] : memref<32xf32, #tpu.memory_space<smem>>
    %304 = vector.broadcast %303 : f32 to vector<8x128xf32>
    %305 = arith.mulf %302, %304 : vector<8x128xf32>
    %306 = arith.addf %294, %305 : vector<8x128xf32>
    %c25 = arith.constant 25 : index
    %307 = memref.load %arg2[%c25] : memref<32xf32, #tpu.memory_space<smem>>
    %308 = vector.broadcast %307 : f32 to vector<8x128xf32>
    %309 = arith.mulf %0, %308 : vector<8x128xf32>
    %c25_78 = arith.constant 25 : index
    %310 = memref.load %arg3[%c25_78] : memref<32xf32, #tpu.memory_space<smem>>
    %311 = vector.broadcast %310 : f32 to vector<8x128xf32>
    %312 = arith.addf %309, %311 : vector<8x128xf32>
    %cst_79 = arith.constant 0.000000e+00 : f32
    %313 = vector.broadcast %cst_79 : f32 to vector<8x128xf32>
    %314 = arith.maximumf %312, %313 : vector<8x128xf32>
    %c25_80 = arith.constant 25 : index
    %315 = memref.load %arg4[%c25_80] : memref<32xf32, #tpu.memory_space<smem>>
    %316 = vector.broadcast %315 : f32 to vector<8x128xf32>
    %317 = arith.mulf %314, %316 : vector<8x128xf32>
    %318 = arith.addf %306, %317 : vector<8x128xf32>
    %c26 = arith.constant 26 : index
    %319 = memref.load %arg2[%c26] : memref<32xf32, #tpu.memory_space<smem>>
    %320 = vector.broadcast %319 : f32 to vector<8x128xf32>
    %321 = arith.mulf %0, %320 : vector<8x128xf32>
    %c26_81 = arith.constant 26 : index
    %322 = memref.load %arg3[%c26_81] : memref<32xf32, #tpu.memory_space<smem>>
    %323 = vector.broadcast %322 : f32 to vector<8x128xf32>
    %324 = arith.addf %321, %323 : vector<8x128xf32>
    %cst_82 = arith.constant 0.000000e+00 : f32
    %325 = vector.broadcast %cst_82 : f32 to vector<8x128xf32>
    %326 = arith.maximumf %324, %325 : vector<8x128xf32>
    %c26_83 = arith.constant 26 : index
    %327 = memref.load %arg4[%c26_83] : memref<32xf32, #tpu.memory_space<smem>>
    %328 = vector.broadcast %327 : f32 to vector<8x128xf32>
    %329 = arith.mulf %326, %328 : vector<8x128xf32>
    %330 = arith.addf %318, %329 : vector<8x128xf32>
    %c27 = arith.constant 27 : index
    %331 = memref.load %arg2[%c27] : memref<32xf32, #tpu.memory_space<smem>>
    %332 = vector.broadcast %331 : f32 to vector<8x128xf32>
    %333 = arith.mulf %0, %332 : vector<8x128xf32>
    %c27_84 = arith.constant 27 : index
    %334 = memref.load %arg3[%c27_84] : memref<32xf32, #tpu.memory_space<smem>>
    %335 = vector.broadcast %334 : f32 to vector<8x128xf32>
    %336 = arith.addf %333, %335 : vector<8x128xf32>
    %cst_85 = arith.constant 0.000000e+00 : f32
    %337 = vector.broadcast %cst_85 : f32 to vector<8x128xf32>
    %338 = arith.maximumf %336, %337 : vector<8x128xf32>
    %c27_86 = arith.constant 27 : index
    %339 = memref.load %arg4[%c27_86] : memref<32xf32, #tpu.memory_space<smem>>
    %340 = vector.broadcast %339 : f32 to vector<8x128xf32>
    %341 = arith.mulf %338, %340 : vector<8x128xf32>
    %342 = arith.addf %330, %341 : vector<8x128xf32>
    %c28 = arith.constant 28 : index
    %343 = memref.load %arg2[%c28] : memref<32xf32, #tpu.memory_space<smem>>
    %344 = vector.broadcast %343 : f32 to vector<8x128xf32>
    %345 = arith.mulf %0, %344 : vector<8x128xf32>
    %c28_87 = arith.constant 28 : index
    %346 = memref.load %arg3[%c28_87] : memref<32xf32, #tpu.memory_space<smem>>
    %347 = vector.broadcast %346 : f32 to vector<8x128xf32>
    %348 = arith.addf %345, %347 : vector<8x128xf32>
    %cst_88 = arith.constant 0.000000e+00 : f32
    %349 = vector.broadcast %cst_88 : f32 to vector<8x128xf32>
    %350 = arith.maximumf %348, %349 : vector<8x128xf32>
    %c28_89 = arith.constant 28 : index
    %351 = memref.load %arg4[%c28_89] : memref<32xf32, #tpu.memory_space<smem>>
    %352 = vector.broadcast %351 : f32 to vector<8x128xf32>
    %353 = arith.mulf %350, %352 : vector<8x128xf32>
    %354 = arith.addf %342, %353 : vector<8x128xf32>
    %c29 = arith.constant 29 : index
    %355 = memref.load %arg2[%c29] : memref<32xf32, #tpu.memory_space<smem>>
    %356 = vector.broadcast %355 : f32 to vector<8x128xf32>
    %357 = arith.mulf %0, %356 : vector<8x128xf32>
    %c29_90 = arith.constant 29 : index
    %358 = memref.load %arg3[%c29_90] : memref<32xf32, #tpu.memory_space<smem>>
    %359 = vector.broadcast %358 : f32 to vector<8x128xf32>
    %360 = arith.addf %357, %359 : vector<8x128xf32>
    %cst_91 = arith.constant 0.000000e+00 : f32
    %361 = vector.broadcast %cst_91 : f32 to vector<8x128xf32>
    %362 = arith.maximumf %360, %361 : vector<8x128xf32>
    %c29_92 = arith.constant 29 : index
    %363 = memref.load %arg4[%c29_92] : memref<32xf32, #tpu.memory_space<smem>>
    %364 = vector.broadcast %363 : f32 to vector<8x128xf32>
    %365 = arith.mulf %362, %364 : vector<8x128xf32>
    %366 = arith.addf %354, %365 : vector<8x128xf32>
    %c30 = arith.constant 30 : index
    %367 = memref.load %arg2[%c30] : memref<32xf32, #tpu.memory_space<smem>>
    %368 = vector.broadcast %367 : f32 to vector<8x128xf32>
    %369 = arith.mulf %0, %368 : vector<8x128xf32>
    %c30_93 = arith.constant 30 : index
    %370 = memref.load %arg3[%c30_93] : memref<32xf32, #tpu.memory_space<smem>>
    %371 = vector.broadcast %370 : f32 to vector<8x128xf32>
    %372 = arith.addf %369, %371 : vector<8x128xf32>
    %cst_94 = arith.constant 0.000000e+00 : f32
    %373 = vector.broadcast %cst_94 : f32 to vector<8x128xf32>
    %374 = arith.maximumf %372, %373 : vector<8x128xf32>
    %c30_95 = arith.constant 30 : index
    %375 = memref.load %arg4[%c30_95] : memref<32xf32, #tpu.memory_space<smem>>
    %376 = vector.broadcast %375 : f32 to vector<8x128xf32>
    %377 = arith.mulf %374, %376 : vector<8x128xf32>
    %378 = arith.addf %366, %377 : vector<8x128xf32>
    %c31 = arith.constant 31 : index
    %379 = memref.load %arg2[%c31] : memref<32xf32, #tpu.memory_space<smem>>
    %380 = vector.broadcast %379 : f32 to vector<8x128xf32>
    %381 = arith.mulf %0, %380 : vector<8x128xf32>
    %c31_96 = arith.constant 31 : index
    %382 = memref.load %arg3[%c31_96] : memref<32xf32, #tpu.memory_space<smem>>
    %383 = vector.broadcast %382 : f32 to vector<8x128xf32>
    %384 = arith.addf %381, %383 : vector<8x128xf32>
    %cst_97 = arith.constant 0.000000e+00 : f32
    %385 = vector.broadcast %cst_97 : f32 to vector<8x128xf32>
    %386 = arith.maximumf %384, %385 : vector<8x128xf32>
    %c31_98 = arith.constant 31 : index
    %387 = memref.load %arg4[%c31_98] : memref<32xf32, #tpu.memory_space<smem>>
    %388 = vector.broadcast %387 : f32 to vector<8x128xf32>
    %389 = arith.mulf %386, %388 : vector<8x128xf32>
    %390 = arith.addf %378, %389 : vector<8x128xf32>
    %c0_99 = arith.constant 0 : index
    %c0_100 = arith.constant 0 : index
    %391 = vector.load %arg6[%c0_99, %c0_100] : memref<8x128xf32, #tpu.memory_space<vmem>>, vector<8x128xf32>
    tpu.vector_store %arg6[%c0_99, %c0_100], %390 {strides = array<i32>} : memref<8x128xf32, #tpu.memory_space<vmem>>, vector<8x128xf32>,
    return
  }
  func.func @transform_0(%arg0: i32) -> (i32, i32) {
    %c0_i32 = arith.constant 0 : i32
    %c0_i32_0 = arith.constant 0 : i32
    return %arg0, %c0_i32 : i32, i32
  }
  func.func @transform_1(%arg0: i32) -> i32 {
    %c0_i32 = arith.constant 0 : i32
    %c0_i32_0 = arith.constant 0 : i32
    return %c0_i32 : i32
  }
  func.func @transform_2(%arg0: i32) -> i32 {
    %c0_i32 = arith.constant 0 : i32
    %c0_i32_0 = arith.constant 0 : i32
    return %c0_i32 : i32
  }
  func.func @transform_3(%arg0: i32) -> i32 {
    %c0_i32 = arith.constant 0 : i32
    %c0_i32_0 = arith.constant 0 : i32
    return %c0_i32 : i32
  }
  func.func @transform_4(%arg0: i32) -> i32 {
    %c0_i32 = arith.constant 0 : i32
    %c0_i32_0 = arith.constant 0 : i32
    return %c0_i32 : i32
  }
  func.func @transform_5(%arg0: i32) -> (i32, i32) {
    %c0_i32 = arith.constant 0 : i32
    %c0_i32_0 = arith.constant 0 : i32
    return %arg0, %c0_i32 : i32, i32
  }
}

</mosaic_0001>

<bundles_post_ra>
// kernel: tpu_custom_call.1
= control target key start
LH: loop header
LB: loop body
LE: loop exit
PB: predicated region body
PF: predicated region fallthrough
CT: control target
= control target key end

     0   :  { %10 = vsyncpa [#allocation3], 0  ;;  %s833_s0 = inlined_call_operand.hbm [shape: f32[8,128], index: 0, kind: input, shape index: {}]   ;;  %s834_s1 = inlined_call_operand.vmem [shape: f32[32], index: 1, kind: input, shape index: {}]   ;;  %s835_s2 = inlined_call_operand.vmem [shape: f32[32], index: 2, kind: input, shape index: {}]   ;;  %s836_s3 = inlined_call_operand.vmem [shape: f32[32], index: 3, kind: input, shape index: {}]   ;;  %s837_s4 = inlined_call_operand.vmem [shape: f32[2], index: 4, kind: input, shape index: {}]   ;;  %s838_s5 = inlined_call_operand.hbm [shape: f32[8,128], index: 5, kind: output, shape index: {}]  }
   0x1   :  { %11 = vsyncpa [#allocation5], 0 }
   0x2   :  { %12 = vsyncpa [#allocation8], 0 }
   0x3   :  { %13 = vsyncpa [#allocation11], 0  ;;  %s41_s20 = sshll.u32 %s835_s2, 4  ;;  %s42_s20 = int_to_ptr.vmem [resolvable:$true] %s41_s20 }
   0x4   :  { %14 = vsyncpa [#allocation4], 0  ;;  %s559_s21 = scalar_lea.vmem %s42_s20, 16  ;;  %p564_p1 = scmp.lt.s32.totalorder %s42_s20, %s42_s20 }
   0x5   :  { %p560_p0 = scmp.ne.s32.totalorder %s42_s20, %s559_s21  ;;  %p565_p2 = scmp.lt.s32.totalorder %s559_s21, %s559_s21 }
   0x7   :  { %p566_p3 = por %p565_p2, %p564_p1 }
   0x9   :  { %p567_p4 = pnand %p566_p3, %p560_p0 }
   0xb   :  { %570 = shalt.err (!%p567_p4)
}
   0xc   :  { %s657_s22 = smov [#allocation7]   ;;  %s658_s23 = smov [#allocation2]  }
   0xd   :  { %44 = dma.vmem_to_smem %s42_s20, 16, %s657_s22, [#allocation8]  }
   0xe   :  { %s21_s24 = sshll.u32 %s658_s23, 4  ;;  %s31_s27 = sshll.u32 %s834_s1, 4  ;;  %s22_s24 = int_to_ptr.vmem [resolvable:$true] %s21_s24  ;;  %s32_s27 = int_to_ptr.vmem [resolvable:$true] %s31_s27 }
   0xf   :  { %s579_s2 = scalar_lea.vmem %s22_s24, 128  ;;  %p584_p6 = scmp.lt.s32.totalorder %s22_s24, %s22_s24 }
  0x10   :  { %p580_p5 = scmp.ne.s32.totalorder %s22_s24, %s579_s2  ;;  %p585_p7 = scmp.lt.s32.totalorder %s579_s2, %s579_s2 }
  0x12   :  { %p586_p8 = por %p585_p7, %p584_p6 }
  0x14   :  { %p587_p9 = pnand %p586_p8, %p580_p5 }
  0x16   :  { %590 = shalt.err (!%p587_p9)
}
  0x17   :  { %24 = dma.hbm_to_vmem [thread:$0]  %s833_s0, 128, %s22_s24, [#allocation3]  }
  0x18   :  { %s51_s7 = sshll.u32 %s836_s3, 4  ;;  %s591_s8 = scalar_lea.vmem %s32_s27, 16  ;;  %s52_s7 = int_to_ptr.vmem [resolvable:$true] %s51_s7 }
  0x19   :  { %p592_p10 = scmp.ne.s32.totalorder %s32_s27, %s591_s8  ;;  %p596_p11 = scmp.lt.s32.totalorder %s32_s27, %s32_s27 }
  0x1a   :  { %p597_p12 = scmp.lt.s32.totalorder %s591_s8, %s591_s8 }
  0x1c   :  { %p598_p13 = por %p597_p12, %p596_p11 }
  0x1e   :  { %p599_p0 = pnand %p598_p13, %p592_p10 }
  0x20   :  { %602 = shalt.err (!%p599_p0)
}
  0x21   :  { %s659_s1 = smov [#allocation6]   ;;  %s603_s9 = scalar_lea.vmem %s52_s7, 16 }
  0x22   :  { %34 = dma.vmem_to_smem %s32_s27, 16, %s659_s1, [#allocation5]  }
  0x23   :  { %p604_p1 = scmp.ne.s32.totalorder %s52_s7, %s603_s9  ;;  %p608_p2 = scmp.lt.s32.totalorder %s52_s7, %s52_s7 }
  0x24   :  { %p609_p3 = scmp.lt.s32.totalorder %s603_s9, %s603_s9 }
  0x26   :  { %p610_p4 = por %p609_p3, %p608_p2 }
  0x28   :  { %p611_p5 = pnand %p610_p4, %p604_p1 }
  0x2a   :  { %614 = shalt.err (!%p611_p5)
}
  0x2b   :  { %s660_s0 = smov [#allocation9]   ;;  %s61_s11 = sshll.u32 %s837_s4, 4  ;;  %s62_s11 = int_to_ptr.vmem [resolvable:$true] %s61_s11 }
  0x2c   :  { %54 = dma.vmem_to_smem %s52_s7, 16, %s660_s0, [#allocation8]  }
  0x2d   :  { %s615_s12 = scalar_lea.vmem %s62_s11, 16  ;;  %p620_p7 = scmp.lt.s32.totalorder %s62_s11, %s62_s11 }
  0x2e   :  { %p616_p6 = scmp.ne.s32.totalorder %s62_s11, %s615_s12  ;;  %p621_p8 = scmp.lt.s32.totalorder %s615_s12, %s615_s12 }
  0x30   :  { %p622_p9 = por %p621_p8, %p620_p7 }
  0x32   :  { %p623_p10 = pnand %p622_p9, %p616_p6 }
  0x34   :  { %626 = shalt.err (!%p623_p10)
}
  0x35   :  { %s661_s13 = smov [#allocation10]  }
  0x36   :  { %64 = dma.vmem_to_smem %s62_s11, 16, %s661_s13, [#allocation11]  }
  0x37   :  { %647 = dma.done.wait [#allocation3], 128  }
  0x38   :  { %648 = vsyncadd [#allocation3], 4294967168 }
  0x39   :  { %649 = dma.done.wait [#allocation5], 16  }
  0x3a   :  { %650 = vsyncadd [#allocation5], 4294967280 }
  0x3b   :  { %651 = dma.done.wait [#allocation8], 32  }
  0x3c   :  { %652 = vsyncadd [#allocation8], 4294967264 }
  0x3d   :  { %653 = dma.done.wait [#allocation11], 16  }
  0x3e   :  { %654 = vsyncadd [#allocation11], 4294967280 }
  0x3f   :  { %80 = sfence }
  0x40   :  { %s82_s4 = sld [smem:[#allocation10]]  ;;  %v708_v0 = vld [vmem:[#allocation2] sm:$0xff] }
  0x41   :  { %s459_s14 = sld [smem:[#allocation10 + $0x1]] }
  0x42   :  { %s88_s15 = sld [smem:[#allocation6]] }
  0x43   :  { %s91_s16 = sld [smem:[#allocation7]] }
  0x44   :  { %s95_s17 = sld [smem:[#allocation9]] }
  0x45   :  { %s460_s18 = sld [smem:[#allocation6 + $0x1]] }
  0x46   :  { %v84_v1 = vstv %s82_s4  ;;  %s461_s19 = sld [smem:[#allocation7 + $0x1]] }
  0x47   :  { %s710_s20 = sld [smem:[#allocation9 + $0x1]]  ;;  %v85_v3 = vmul.f32 %v84_v1, %v708_v0  ;;  %v86_v6 = vstv %s459_s14 }
  0x48   :  { %v89_v2 = vstv %s88_s15  ;;  %s463_s21 = sld [smem:[#allocation6 + $0x2]] }
  0x49   :  { %v90_v4 = vmul.f32 %v89_v2, %v708_v0  ;;  %v92_v5 = vstv %s91_s16  ;;  %s464_s22 = sld [smem:[#allocation7 + $0x2]]  ;;  %v87_v12 = vadd.f32 %v86_v6, %v85_v3 }
  0x4a   :  { %s714_s23 = sld [smem:[#allocation9 + $0x2]]  ;;  %v96_v9 = vstv %s95_s17 }
  0x4b   :  { %v93_v7 = vadd.f32 %v92_v5, %v90_v4  ;;  %v100_v8 = vstv %s460_s18  ;;  %s466_s24 = sld [smem:[#allocation6 + $0x3]] }
  0x4c   :  { %v101_v10 = vmul.f32 %v100_v8, %v708_v0  ;;  %v103_v11 = vstv %s461_s19  ;;  %s467_s25 = sld [smem:[#allocation7 + $0x3]] }
  0x4d   :  { %v94_v13 = vmax.f32 %v93_v7, 0.0  ;;  %s717_s26 = sld [smem:[#allocation9 + $0x3]]  ;;  %v107_v17 = vstv %s710_s20 }
  0x4e   :  { %v104_v14 = vadd.f32 %v103_v11, %v101_v10  ;;  %v111_v15 = vstv %s463_s21  ;;  %s469_s27 = sld [smem:[#allocation6 + $0x4]] }
  0x4f   :  { %v97_v16 = vmul.f32 %v96_v9, %v94_v13  ;;  %v112_v18 = vmul.f32 %v111_v15, %v708_v0  ;;  %v114_v19 = vstv %s464_s22  ;;  %s470_s2 = sld [smem:[#allocation7 + $0x4]] }
  0x50   :  { %v105_v20 = vmax.f32 %v104_v14, 0.0  ;;  %s721_s28 = sld [smem:[#allocation9 + $0x4]]  ;;  %v118_v25 = vstv %s714_s23 }
  0x51   :  { %v98_v21 = vadd.f32 %v97_v16, %v87_v12  ;;  %v115_v22 = vadd.f32 %v114_v19, %v112_v18  ;;  %v122_v23 = vstv %s466_s24  ;;  %s472_s29 = sld [smem:[#allocation6 + $0x5]] }
  0x52   :  { %v108_v24 = vmul.f32 %v107_v17, %v105_v20  ;;  %v123_v26 = vmul.f32 %v122_v23, %v708_v0  ;;  %v125_v27 = vstv %s467_s25  ;;  %s473_s30 = sld [smem:[#allocation7 + $0x5]] }
  0x53   :  { %v116_v28 = vmax.f32 %v115_v22, 0.0  ;;  %s725_s6 = sld [smem:[#allocation9 + $0x5]]  ;;  %v129_v33 = vstv %s717_s26 }
  0x54   :  { %v109_v29 = vadd.f32 %v108_v24, %v98_v21  ;;  %v126_v30 = vadd.f32 %v125_v27, %v123_v26  ;;  %v133_v31 = vstv %s469_s27  ;;  %s475_s7 = sld [smem:[#allocation6 + $0x6]] }
  0x55   :  { %v119_v32 = vmul.f32 %v118_v25, %v116_v28  ;;  %v134_v34 = vmul.f32 %v133_v31, %v708_v0  ;;  %v136_v35 = vstv %s470_s2  ;;  %s476_s8 = sld [smem:[#allocation7 + $0x6]] }
  0x56   :  { %v127_v36 = vmax.f32 %v126_v30, 0.0  ;;  %s729_s1 = sld [smem:[#allocation9 + $0x6]]  ;;  %v140_v41 = vstv %s721_s28 }
  0x57   :  { %v120_v37 = vadd.f32 %v119_v32, %v109_v29  ;;  %v137_v38 = vadd.f32 %v136_v35, %v134_v34  ;;  %v144_v39 = vstv %s472_s29  ;;  %s478_s9 = sld [smem:[#allocation6 + $0x7]] }
  0x58   :  { %v130_v40 = vmul.f32 %v129_v33, %v127_v36  ;;  %v145_v42 = vmul.f32 %v144_v39, %v708_v0  ;;  %v147_v43 = vstv %s473_s30  ;;  %s479_s0 = sld [smem:[#allocation7 + $0x7]] }
  0x59   :  { %v138_v44 = vmax.f32 %v137_v38, 0.0  ;;  %s733_s3 = sld [smem:[#allocation9 + $0x7]]  ;;  %v151_v49 = vstv %s725_s6 }
  0x5a   :  { %v131_v45 = vadd.f32 %v130_v40, %v120_v37  ;;  %v148_v46 = vadd.f32 %v147_v43, %v145_v42  ;;  %v155_v47 = vstv %s475_s7  ;;  %s481_s10 = sld [smem:[#allocation6 + $0x8]] }
  0x5b   :  { %v141_v48 = vmul.f32 %v140_v41, %v138_v44  ;;  %v156_v50 = vmul.f32 %v155_v47, %v708_v0  ;;  %v158_v51 = vstv %s476_s8  ;;  %s482_s11 = sld [smem:[#allocation7 + $0x8]] }
  0x5c   :  { %v149_v52 = vmax.f32 %v148_v46, 0.0  ;;  %s737_s12 = sld [smem:[#allocation9 + $0x8]]  ;;  %v162_v57 = vstv %s729_s1 }
  0x5d   :  { %v142_v53 = vadd.f32 %v141_v48, %v131_v45  ;;  %v159_v54 = vadd.f32 %v158_v51, %v156_v50  ;;  %v166_v55 = vstv %s478_s9  ;;  %s484_s13 = sld [smem:[#allocation6 + $0x9]] }
  0x5e   :  { %v152_v56 = vmul.f32 %v151_v49, %v149_v52  ;;  %v167_v58 = vmul.f32 %v166_v55, %v708_v0  ;;  %v169_v59 = vstv %s479_s0  ;;  %s485_s4 = sld [smem:[#allocation7 + $0x9]] }
  0x5f   :  { %v160_v60 = vmax.f32 %v159_v54, 0.0  ;;  %s741_s14 = sld [smem:[#allocation9 + $0x9]]  ;;  %v173_v2 = vstv %s733_s3 }
  0x60   :  { %v153_v61 = vadd.f32 %v152_v56, %v142_v53  ;;  %v170_v62 = vadd.f32 %v169_v59, %v167_v58  ;;  %v177_v63 = vstv %s481_s10  ;;  %s487_s15 = sld [smem:[#allocation6 + $0xa]] }
  0x61   :  { %v163_v1 = vmul.f32 %v162_v57, %v160_v60  ;;  %v178_v3 = vmul.f32 %v177_v63, %v708_v0  ;;  %v180_v4 = vstv %s482_s11  ;;  %s488_s16 = sld [smem:[#allocation7 + $0xa]] }
  0x62   :  { %v171_v5 = vmax.f32 %v170_v62, 0.0  ;;  %s745_s17 = sld [smem:[#allocation9 + $0xa]]  ;;  %v184_v10 = vstv %s737_s12 }
  0x63   :  { %v164_v6 = vadd.f32 %v163_v1, %v153_v61  ;;  %v181_v7 = vadd.f32 %v180_v4, %v178_v3  ;;  %v188_v8 = vstv %s484_s13  ;;  %s490_s18 = sld [smem:[#allocation6 + $0xb]] }
  0x64   :  { %v174_v9 = vmul.f32 %v173_v2, %v171_v5  ;;  %v189_v11 = vmul.f32 %v188_v8, %v708_v0  ;;  %v191_v12 = vstv %s485_s4  ;;  %s491_s19 = sld [smem:[#allocation7 + $0xb]] }
  0x65   :  { %v182_v13 = vmax.f32 %v181_v7, 0.0  ;;  %s749_s20 = sld [smem:[#allocation9 + $0xb]]  ;;  %v195_v18 = vstv %s741_s14 }
  0x66   :  { %v175_v14 = vadd.f32 %v174_v9, %v164_v6  ;;  %v192_v15 = vadd.f32 %v191_v12, %v189_v11  ;;  %v199_v16 = vstv %s487_s15  ;;  %s493_s21 = sld [smem:[#allocation6 + $0xc]] }
  0x67   :  { %v185_v17 = vmul.f32 %v184_v10, %v182_v13  ;;  %v200_v19 = vmul.f32 %v199_v16, %v708_v0  ;;  %v202_v20 = vstv %s488_s16  ;;  %s494_s22 = sld [smem:[#allocation7 + $0xc]] }
  0x68   :  { %v193_v21 = vmax.f32 %v192_v15, 0.0  ;;  %s753_s23 = sld [smem:[#allocation9 + $0xc]]  ;;  %v206_v26 = vstv %s745_s17 }
  0x69   :  { %v186_v22 = vadd.f32 %v185_v17, %v175_v14  ;;  %v203_v23 = vadd.f32 %v202_v20, %v200_v19  ;;  %v210_v24 = vstv %s490_s18  ;;  %s496_s24 = sld [smem:[#allocation6 + $0xd]] }
  0x6a   :  { %v196_v25 = vmul.f32 %v195_v18, %v193_v21  ;;  %v211_v27 = vmul.f32 %v210_v24, %v708_v0  ;;  %v213_v28 = vstv %s491_s19  ;;  %s497_s25 = sld [smem:[#allocation7 + $0xd]] }
  0x6b   :  { %v204_v29 = vmax.f32 %v203_v23, 0.0  ;;  %s757_s26 = sld [smem:[#allocation9 + $0xd]]  ;;  %v217_v34 = vstv %s749_s20 }
  0x6c   :  { %v197_v30 = vadd.f32 %v196_v25, %v186_v22  ;;  %v214_v31 = vadd.f32 %v213_v28, %v211_v27  ;;  %v221_v32 = vstv %s493_s21  ;;  %s499_s27 = sld [smem:[#allocation6 + $0xe]] }
  0x6d   :  { %v207_v33 = vmul.f32 %v206_v26, %v204_v29  ;;  %v222_v35 = vmul.f32 %v221_v32, %v708_v0  ;;  %v224_v36 = vstv %s494_s22  ;;  %s500_s2 = sld [smem:[#allocation7 + $0xe]] }
  0x6e   :  { %v215_v37 = vmax.f32 %v214_v31, 0.0  ;;  %s761_s28 = sld [smem:[#allocation9 + $0xe]]  ;;  %v228_v42 = vstv %s753_s23 }
  0x6f   :  { %v208_v38 = vadd.f32 %v207_v33, %v197_v30  ;;  %v225_v39 = vadd.f32 %v224_v36, %v222_v35  ;;  %v232_v40 = vstv %s496_s24  ;;  %s502_s29 = sld [smem:[#allocation6 + $0xf]] }
  0x70   :  { %v218_v41 = vmul.f32 %v217_v34, %v215_v37  ;;  %v233_v43 = vmul.f32 %v232_v40, %v708_v0  ;;  %v235_v44 = vstv %s497_s25  ;;  %s503_s30 = sld [smem:[#allocation7 + $0xf]] }
  0x71   :  { %v226_v45 = vmax.f32 %v225_v39, 0.0  ;;  %s765_s6 = sld [smem:[#allocation9 + $0xf]]  ;;  %v239_v50 = vstv %s757_s26 }
  0x72   :  { %v219_v46 = vadd.f32 %v218_v41, %v208_v38  ;;  %v236_v47 = vadd.f32 %v235_v44, %v233_v43  ;;  %v243_v48 = vstv %s499_s27  ;;  %s505_s7 = sld [smem:[#allocation6 + $0x10]] }
  0x73   :  { %v229_v49 = vmul.f32 %v228_v42, %v226_v45  ;;  %v244_v51 = vmul.f32 %v243_v48, %v708_v0  ;;  %v246_v52 = vstv %s500_s2  ;;  %s506_s8 = sld [smem:[#allocation7 + $0x10]] }
  0x74   :  { %v237_v53 = vmax.f32 %v236_v47, 0.0  ;;  %s769_s1 = sld [smem:[#allocation9 + $0x10]]  ;;  %v250_v58 = vstv %s761_s28 }
  0x75   :  { %v230_v54 = vadd.f32 %v229_v49, %v219_v46  ;;  %v247_v55 = vadd.f32 %v246_v52, %v244_v51  ;;  %v254_v56 = vstv %s502_s29  ;;  %s508_s9 = sld [smem:[#allocation6 + $0x11]] }
  0x76   :  { %v240_v57 = vmul.f32 %v239_v50, %v237_v53  ;;  %v255_v59 = vmul.f32 %v254_v56, %v708_v0  ;;  %v257_v60 = vstv %s503_s30  ;;  %s509_s0 = sld [smem:[#allocation7 + $0x11]] }
  0x77   :  { %v248_v61 = vmax.f32 %v247_v55, 0.0  ;;  %s773_s3 = sld [smem:[#allocation9 + $0x11]]  ;;  %v261_v3 = vstv %s765_s6 }
  0x78   :  { %v241_v62 = vadd.f32 %v240_v57, %v230_v54  ;;  %v258_v63 = vadd.f32 %v257_v60, %v255_v59  ;;  %v265_v1 = vstv %s505_s7  ;;  %s511_s10 = sld [smem:[#allocation6 + $0x12]] }
  0x79   :  { %v251_v2 = vmul.f32 %v250_v58, %v248_v61  ;;  %v266_v4 = vmul.f32 %v265_v1, %v708_v0  ;;  %v268_v5 = vstv %s506_s8  ;;  %s512_s11 = sld [smem:[#allocation7 + $0x12]] }
  0x7a   :  { %v259_v6 = vmax.f32 %v258_v63, 0.0  ;;  %s777_s12 = sld [smem:[#allocation9 + $0x12]]  ;;  %v272_v11 = vstv %s769_s1 }
  0x7b   :  { %v252_v7 = vadd.f32 %v251_v2, %v241_v62  ;;  %v269_v8 = vadd.f32 %v268_v5, %v266_v4  ;;  %v276_v9 = vstv %s508_s9  ;;  %s514_s13 = sld [smem:[#allocation6 + $0x13]] }
  0x7c   :  { %v262_v10 = vmul.f32 %v261_v3, %v259_v6  ;;  %v277_v12 = vmul.f32 %v276_v9, %v708_v0  ;;  %v279_v13 = vstv %s509_s0  ;;  %s515_s4 = sld [smem:[#allocation7 + $0x13]] }
  0x7d   :  { %v270_v14 = vmax.f32 %v269_v8, 0.0  ;;  %s781_s14 = sld [smem:[#allocation9 + $0x13]]  ;;  %v283_v19 = vstv %s773_s3 }
  0x7e   :  { %v263_v15 = vadd.f32 %v262_v10, %v252_v7  ;;  %v280_v16 = vadd.f32 %v279_v13, %v277_v12  ;;  %v287_v17 = vstv %s511_s10  ;;  %s517_s15 = sld [smem:[#allocation6 + $0x14]] }
  0x7f   :  { %v273_v18 = vmul.f32 %v272_v11, %v270_v14  ;;  %v288_v20 = vmul.f32 %v287_v17, %v708_v0  ;;  %v290_v21 = vstv %s512_s11  ;;  %s518_s16 = sld [smem:[#allocation7 + $0x14]] }
  0x80   :  { %v281_v22 = vmax.f32 %v280_v16, 0.0  ;;  %s785_s17 = sld [smem:[#allocation9 + $0x14]]  ;;  %v294_v27 = vstv %s777_s12 }
  0x81   :  { %v274_v23 = vadd.f32 %v273_v18, %v263_v15  ;;  %v291_v24 = vadd.f32 %v290_v21, %v288_v20  ;;  %v298_v25 = vstv %s514_s13  ;;  %s520_s18 = sld [smem:[#allocation6 + $0x15]] }
  0x82   :  { %v284_v26 = vmul.f32 %v283_v19, %v281_v22  ;;  %v299_v28 = vmul.f32 %v298_v25, %v708_v0  ;;  %v301_v29 = vstv %s515_s4  ;;  %s521_s19 = sld [smem:[#allocation7 + $0x15]] }
  0x83   :  { %v292_v30 = vmax.f32 %v291_v24, 0.0  ;;  %s789_s20 = sld [smem:[#allocation9 + $0x15]]  ;;  %v305_v35 = vstv %s781_s14 }
  0x84   :  { %v285_v31 = vadd.f32 %v284_v26, %v274_v23  ;;  %v302_v32 = vadd.f32 %v301_v29, %v299_v28  ;;  %v309_v33 = vstv %s517_s15  ;;  %s523_s21 = sld [smem:[#allocation6 + $0x16]] }
  0x85   :  { %v295_v34 = vmul.f32 %v294_v27, %v292_v30  ;;  %v310_v36 = vmul.f32 %v309_v33, %v708_v0  ;;  %v312_v37 = vstv %s518_s16  ;;  %s524_s22 = sld [smem:[#allocation7 + $0x16]] }
  0x86   :  { %v303_v38 = vmax.f32 %v302_v32, 0.0  ;;  %s793_s23 = sld [smem:[#allocation9 + $0x16]]  ;;  %v316_v43 = vstv %s785_s17 }
  0x87   :  { %v296_v39 = vadd.f32 %v295_v34, %v285_v31  ;;  %v313_v40 = vadd.f32 %v312_v37, %v310_v36  ;;  %v320_v41 = vstv %s520_s18  ;;  %s526_s24 = sld [smem:[#allocation6 + $0x17]] }
  0x88   :  { %v306_v42 = vmul.f32 %v305_v35, %v303_v38  ;;  %v321_v44 = vmul.f32 %v320_v41, %v708_v0  ;;  %v323_v45 = vstv %s521_s19  ;;  %s527_s25 = sld [smem:[#allocation7 + $0x17]] }
  0x89   :  { %v314_v46 = vmax.f32 %v313_v40, 0.0  ;;  %s797_s26 = sld [smem:[#allocation9 + $0x17]]  ;;  %v327_v51 = vstv %s789_s20 }
  0x8a   :  { %v307_v47 = vadd.f32 %v306_v42, %v296_v39  ;;  %v324_v48 = vadd.f32 %v323_v45, %v321_v44  ;;  %v331_v49 = vstv %s523_s21  ;;  %s529_s27 = sld [smem:[#allocation6 + $0x18]]  ;;  %s662_s21 = smov [#allocation12]  }
  0x8b   :  { %v317_v50 = vmul.f32 %v316_v43, %v314_v46  ;;  %v332_v52 = vmul.f32 %v331_v49, %v708_v0  ;;  %v334_v53 = vstv %s524_s22  ;;  %s530_s2 = sld [smem:[#allocation7 + $0x18]]  ;;  %s447_s22 = sshll.u32 %s662_s21, 4  ;;  %s448_s22 = int_to_ptr.vmem [resolvable:$true] %s447_s22 }
  0x8c   :  { %v325_v54 = vmax.f32 %v324_v48, 0.0  ;;  %s801_s28 = sld [smem:[#allocation9 + $0x18]]  ;;  %v338_v59 = vstv %s793_s23  ;;  %s627_s23 = scalar_lea.vmem %s448_s22, 128 }
  0x8d   :  { %v318_v55 = vadd.f32 %v317_v50, %v307_v47  ;;  %v335_v56 = vadd.f32 %v334_v53, %v332_v52  ;;  %v342_v57 = vstv %s526_s24  ;;  %s532_s29 = sld [smem:[#allocation6 + $0x19]]  ;;  %p628_p11 = scmp.ne.s32.totalorder %s448_s22, %s627_s23 }
  0x8e   :  { %v328_v58 = vmul.f32 %v327_v51, %v325_v54  ;;  %v343_v60 = vmul.f32 %v342_v57, %v708_v0  ;;  %v345_v61 = vstv %s527_s25  ;;  %s533_s30 = sld [smem:[#allocation7 + $0x19]]  ;;  %p632_p12 = scmp.lt.s32.totalorder %s448_s22, %s448_s22 }
  0x8f   :  { %v336_v62 = vmax.f32 %v335_v56, 0.0  ;;  %s805_s6 = sld [smem:[#allocation9 + $0x19]]  ;;  %v349_v4 = vstv %s797_s26  ;;  %p633_p13 = scmp.lt.s32.totalorder %s627_s23, %s627_s23 }
  0x90   :  { %v329_v63 = vadd.f32 %v328_v58, %v318_v55  ;;  %v346_v1 = vadd.f32 %v345_v61, %v343_v60  ;;  %v353_v2 = vstv %s529_s27  ;;  %s535_s7 = sld [smem:[#allocation6 + $0x1a]] }
  0x91   :  { %v339_v3 = vmul.f32 %v338_v59, %v336_v62  ;;  %v354_v5 = vmul.f32 %v353_v2, %v708_v0  ;;  %v356_v6 = vstv %s530_s2  ;;  %s536_s8 = sld [smem:[#allocation7 + $0x1a]]  ;;  %p634_p0 = por %p633_p13, %p632_p12 }
  0x92   :  { %v347_v7 = vmax.f32 %v346_v1, 0.0  ;;  %s809_s1 = sld [smem:[#allocation9 + $0x1a]]  ;;  %v360_v12 = vstv %s801_s28 }
  0x93   :  { %v340_v8 = vadd.f32 %v339_v3, %v329_v63  ;;  %v357_v9 = vadd.f32 %v356_v6, %v354_v5  ;;  %v364_v10 = vstv %s532_s29  ;;  %s538_s9 = sld [smem:[#allocation6 + $0x1b]]  ;;  %p635_p1 = pnand %p634_p0, %p628_p11 }
  0x94   :  { %v350_v11 = vmul.f32 %v349_v4, %v347_v7  ;;  %v365_v13 = vmul.f32 %v364_v10, %v708_v0  ;;  %v367_v14 = vstv %s533_s30  ;;  %s539_s0 = sld [smem:[#allocation7 + $0x1b]] }
  0x95   :  { %v358_v15 = vmax.f32 %v357_v9, 0.0  ;;  %s813_s3 = sld [smem:[#allocation9 + $0x1b]]  ;;  %v371_v20 = vstv %s805_s6 }
  0x96   :  { %v351_v16 = vadd.f32 %v350_v11, %v340_v8  ;;  %v368_v17 = vadd.f32 %v367_v14, %v365_v13  ;;  %v375_v18 = vstv %s535_s7  ;;  %s541_s10 = sld [smem:[#allocation6 + $0x1c]] }
  0x97   :  { %v361_v19 = vmul.f32 %v360_v12, %v358_v15  ;;  %v376_v21 = vmul.f32 %v375_v18, %v708_v0  ;;  %v378_v22 = vstv %s536_s8  ;;  %s542_s11 = sld [smem:[#allocation7 + $0x1c]] }
  0x98   :  { %v369_v23 = vmax.f32 %v368_v17, 0.0  ;;  %s817_s12 = sld [smem:[#allocation9 + $0x1c]]  ;;  %v382_v28 = vstv %s809_s1 }
  0x99   :  { %v362_v24 = vadd.f32 %v361_v19, %v351_v16  ;;  %v379_v25 = vadd.f32 %v378_v22, %v376_v21  ;;  %v386_v26 = vstv %s538_s9  ;;  %s544_s13 = sld [smem:[#allocation6 + $0x1d]] }
  0x9a   :  { %v372_v27 = vmul.f32 %v371_v20, %v369_v23  ;;  %v387_v29 = vmul.f32 %v386_v26, %v708_v0  ;;  %v389_v30 = vstv %s539_s0  ;;  %s545_s4 = sld [smem:[#allocation7 + $0x1d]] }
  0x9b   :  { %v380_v31 = vmax.f32 %v379_v25, 0.0  ;;  %s821_s14 = sld [smem:[#allocation9 + $0x1d]]  ;;  %v393_v36 = vstv %s813_s3 }
  0x9c   :  { %v373_v32 = vadd.f32 %v372_v27, %v362_v24  ;;  %v390_v33 = vadd.f32 %v389_v30, %v387_v29  ;;  %v397_v34 = vstv %s541_s10  ;;  %s547_s15 = sld [smem:[#allocation6 + $0x1e]] }
  0x9d   :  { %v383_v35 = vmul.f32 %v382_v28, %v380_v31  ;;  %v398_v37 = vmul.f32 %v397_v34, %v708_v0  ;;  %v400_v38 = vstv %s542_s11  ;;  %s548_s16 = sld [smem:[#allocation7 + $0x1e]] }
  0x9e   :  { %v391_v39 = vmax.f32 %v390_v33, 0.0  ;;  %s549_s17 = sld [smem:[#allocation9 + $0x1e]]  ;;  %v404_v44 = vstv %s817_s12 }
  0x9f   :  { %v384_v40 = vadd.f32 %v383_v35, %v373_v32  ;;  %v401_v41 = vadd.f32 %v400_v38, %v398_v37  ;;  %v408_v42 = vstv %s544_s13  ;;  %s550_s18 = sld [smem:[#allocation6 + $0x1f]] }
  0xa0   :  { %v394_v43 = vmul.f32 %v393_v36, %v391_v39  ;;  %v409_v45 = vmul.f32 %v408_v42, %v708_v0  ;;  %v411_v46 = vstv %s545_s4  ;;  %s551_s19 = sld [smem:[#allocation7 + $0x1f]] }
  0xa1   :  { %v402_v47 = vmax.f32 %v401_v41, 0.0  ;;  %s552_s20 = sld [smem:[#allocation9 + $0x1f]]  ;;  %v415_v52 = vstv %s821_s14 }
  0xa2   :  { %v395_v48 = vadd.f32 %v394_v43, %v384_v40  ;;  %v412_v49 = vadd.f32 %v411_v46, %v409_v45  ;;  %v419_v50 = vstv %s547_s15 }
  0xa3   :  { %v405_v51 = vmul.f32 %v404_v44, %v402_v47  ;;  %v420_v53 = vmul.f32 %v419_v50, %v708_v0  ;;  %v422_v54 = vstv %s548_s16 }
  0xa4   :  { %v413_v55 = vmax.f32 %v412_v49, 0.0  ;;  %v426_v60 = vstv %s549_s17 }
  0xa5   :  { %v406_v56 = vadd.f32 %v405_v51, %v395_v48  ;;  %v423_v57 = vadd.f32 %v422_v54, %v420_v53  ;;  %v430_v58 = vstv %s550_s18 }
  0xa6   :  { %v416_v59 = vmul.f32 %v415_v52, %v413_v55  ;;  %v431_v61 = vmul.f32 %v430_v58, %v708_v0  ;;  %v433_v62 = vstv %s551_s19 }
  0xa7   :  { %v424_v63 = vmax.f32 %v423_v57, 0.0  ;;  %v437_v4 = vstv %s552_s20 }
  0xa8   :  { %v417_v1 = vadd.f32 %v416_v59, %v406_v56  ;;  %v434_v2 = vadd.f32 %v433_v62, %v431_v61 }
  0xa9   :  { %v427_v3 = vmul.f32 %v426_v60, %v424_v63 }
  0xaa   :  { %v435_v5 = vmax.f32 %v434_v2, 0.0 }
  0xab   :  { %v428_v6 = vadd.f32 %v427_v3, %v417_v1 }
  0xac   :  { %v438_v7 = vmul.f32 %v437_v4, %v435_v5 }
  0xae   :  { %v439_v8 = vadd.f32 %v438_v7, %v428_v6 }
  0xb0   :  { %440 = vst [vmem:[#allocation12] sm:$0xff] %v439_v8 }
  0xb1   :  { %638 = shalt.err (!%p635_p1)
}
  0xb2   :  { %450 = dma.vmem_to_hbm [thread:$0]  %s448_s22, 128, %s838_s5, [#allocation4]  }
  0xb3   :  { %655 = dma.done.wait [#allocation4], 128  }
  0xb4   :  { %656 = vsyncadd [#allocation4], 4294967168 }
  0xb5   :  { %454 = vsyncpa [#allocation3], 1 }
  0xb6   :  { %455 = vsyncpa [#allocation4], 1 }
  0xb7   :  { %456 = vsyncpa [#allocation5], 1 }
  0xb8   :  { %457 = vsyncpa [#allocation8], 1 }
  0xb9   :  { %458 = vsyncpa [#allocation11], 1 }

</bundles_post_ra>
